<compile_context>
chip_gen: v7x
topology: tpu7x:2x2x1
jax: 0.10.0
libtpu: 0.0.40
codegen_flags: <defaults>
</compile_context>

<pallas_src>
import functools
import math

import jax
import jax.numpy as jnp
from jax import lax
from jax.experimental import pallas as pl
from jax.experimental.pallas import tpu as pltpu


def _urt_score_kernel(x_ref, wq_ref, bq_ref, wkb_ref, bkb_ref, t_ref, s_ref,
                      out_ref, *, temp):
    x = x_ref[...]            # (Nt, E*F)   flattened prototypes (single input)
    wq = wq_ref[...]          # (E*F, H)    transposed query weight
    bq = bq_ref[...]          # (1, H)
    wkb = wkb_ref[...]        # (E*F, E*H)  block-diagonal kron(I_E, Wk^T)
    bkb = bkb_ref[...]        # (1, E*H)    bk tiled per extractor
    tmat = t_ref[...]         # (H, E*H)    lane-tiling matrix (0/1)
    smat = s_ref[...]         # (E*H, E)    per-extractor segment-sum matrix (0/1)

    # Projections: two flat 2-D MXU matmuls (no batched dot_general).
    q_emb = jnp.dot(x, wq, preferred_element_type=jnp.float32) + bq      # (Nt, H)
    k_emb = jnp.dot(x, wkb, preferred_element_type=jnp.float32) + bkb    # (Nt, E*H)

    # q replicated per extractor along lanes (MXU; avoids a 3-D relayout).
    q_rep = jnp.dot(q_emb, tmat, preferred_element_type=jnp.float32)     # (Nt, E*H)

    # Per-extractor <q, k> and ||k||^2 as segment-sum matmuls.
    dots = jnp.dot(q_rep * k_emb, smat, preferred_element_type=jnp.float32)  # (Nt, E)
    k_sq = jnp.dot(k_emb * k_emb, smat, preferred_element_type=jnp.float32)  # (Nt, E)
    q_sq = jnp.sum(q_emb * q_emb, axis=-1, keepdims=True)                    # (Nt, 1)

    # Cosine similarity; eps clamp on the product of (squared) norms as in
    # torch.F.cosine_similarity; temp folded into the rsqrt scale (EUP path).
    eps2 = jnp.float32(1e-8) * jnp.float32(1e-8)
    scale = lax.rsqrt(jnp.maximum(q_sq * k_sq, eps2)) * jnp.float32(temp)    # (Nt, E)
    raw = dots * scale

    # Row-local softmax over the extractor axis (exact division; no approx).
    m = jnp.max(raw, axis=-1, keepdims=True)
    e = jnp.exp(raw - m)
    out_ref[...] = e / jnp.sum(e, axis=-1, keepdims=True)


def urt_propagation_forward(cat_proto, wq, bq, wk, bk, temp=1.0, n_tile=256):
    """Pallas implementation of URTPropagation.forward (att='cosine')."""
    n_class, n_ext, fea_dim = cat_proto.shape
    hid_dim = wq.shape[0]
    qdim = n_ext * fea_dim
    ekh = n_ext * hid_dim

    # Single activation input, lane-dense (last dim = E*F).
    x = cat_proto.reshape(n_class, qdim).astype(jnp.float32)

    wq_t = wq.T.astype(jnp.float32)                                   # (E*F, H)
    bq2 = bq.reshape(1, hid_dim).astype(jnp.float32)                  # (1, H)
    # Block-diagonal key weight: one 2-D matmul covers all extractors.
    eye_e = jnp.eye(n_ext, dtype=jnp.float32)
    wk_big = jnp.kron(eye_e, wk.T.astype(jnp.float32))                # (E*F, E*H)
    bk_big = jnp.tile(bk.astype(jnp.float32), n_ext).reshape(1, ekh)  # (1, E*H)
    # q_rep[:, e*H + h] = q_emb[:, h]
    t_mat = jnp.kron(jnp.ones((1, n_ext), jnp.float32),
                     jnp.eye(hid_dim, dtype=jnp.float32))             # (H, E*H)
    # out[:, e] = sum_h in[:, e*H + h]
    s_mat = jnp.kron(eye_e, jnp.ones((hid_dim, 1), jnp.float32))      # (E*H, E)

    # Class-axis tile: full array if small, otherwise a sublane-aligned tile
    # (per-step VMEM footprint stays far below the scoped limit on all chips).
    if n_class <= n_tile:
        nt = n_class
    else:
        nt = (n_tile // 8) * 8
    grid = (pl.cdiv(n_class, nt),)

    kernel = functools.partial(_urt_score_kernel, temp=float(temp))

    return pl.pallas_call(
        kernel,
        out_shape=jax.ShapeDtypeStruct((n_class, n_ext), jnp.float32),
        grid=grid,
        in_specs=[
            pl.BlockSpec((nt, qdim), lambda i: (i, 0)),       # activations: tiled, pipelined
            pl.BlockSpec(wq_t.shape, lambda i: (0, 0)),       # weights/constants stay resident
            pl.BlockSpec(bq2.shape, lambda i: (0, 0)),
            pl.BlockSpec(wk_big.shape, lambda i: (0, 0)),
            pl.BlockSpec(bk_big.shape, lambda i: (0, 0)),
            pl.BlockSpec(t_mat.shape, lambda i: (0, 0)),
            pl.BlockSpec(s_mat.shape, lambda i: (0, 0)),
        ],
        out_specs=pl.BlockSpec((nt, n_ext), lambda i: (i, 0)),
        compiler_params=pltpu.CompilerParams(
            dimension_semantics=("parallel",)),
    )(x, wq_t, bq2, wk_big, bk_big, t_mat, s_mat)


def urt_propagation_reference(cat_proto, wq, bq, wk, bk, temp=1.0):
    """Pure-JAX reference mirroring the PyTorch forward (cosine att)."""
    n_class = cat_proto.shape[0]
    q = cat_proto.reshape(n_class, -1)
    q_emb = q @ wq.T + bq
    k_emb = cat_proto @ wk.T + bk
    eps = 1e-8
    w12 = jnp.sum(q_emb[:, None, :] * k_emb, axis=-1)
    w1 = jnp.sum(q_emb * q_emb, axis=-1, keepdims=True)
    w2 = jnp.sum(k_emb * k_emb, axis=-1)
    cos = w12 / jnp.sqrt(jnp.maximum(w1 * w2, eps * eps))   # torch clamps the product
    return jax.nn.softmax(temp * cos, axis=1)


if __name__ == "__main__":
    def run_case(n_class, n_ext, fea_dim, hid_dim, temp, seed):
        query_dim = n_ext * fea_dim
        key_dim = fea_dim
        key = jax.random.PRNGKey(seed)
        k_x, k_wq, k_bq, k_wk, k_bk = jax.random.split(key, 5)

        cat_proto = jax.random.normal(
            k_x, (n_class, n_ext, fea_dim), dtype=jnp.float32)
        # nn.Linear weights: normal(0, 0.001) as in __init__; default bias init.
        wq = 0.001 * jax.random.normal(k_wq, (hid_dim, query_dim), dtype=jnp.float32)
        wk = 0.001 * jax.random.normal(k_wk, (hid_dim, key_dim), dtype=jnp.float32)
        bound_q = 1.0 / math.sqrt(query_dim)
        bound_k = 1.0 / math.sqrt(key_dim)
        bq = jax.random.uniform(k_bq, (hid_dim,), minval=-bound_q, maxval=bound_q,
                                dtype=jnp.float32)
        bk = jax.random.uniform(k_bk, (hid_dim,), minval=-bound_k, maxval=bound_k,
                                dtype=jnp.float32)

        score = urt_propagation_forward(cat_proto, wq, bq, wk, bk, temp=temp)
        score = jax.block_until_ready(score)
        ref = urt_propagation_reference(cat_proto, wq, bq, wk, bk, temp=temp)

        assert score.shape == (n_class, n_ext)
        assert bool(jnp.allclose(score, ref, atol=1e-5, rtol=1e-5)), (
            f"mismatch n_class={n_class}: "
            f"max abs diff = {jnp.max(jnp.abs(score - ref))}")

    # Small base shape from the module (n_class=4, n_extractors=8, fea_dim=32,
    # hid_dim=32): single-block path.
    run_case(n_class=4, n_ext=8, fea_dim=32, hid_dim=32, temp=1.0, seed=0)
    # Larger class count: exercises the tiled "parallel" grid (2 blocks,
    # partial last block whose out-of-bounds rows are discarded on store).
    run_case(n_class=300, n_ext=8, fea_dim=32, hid_dim=32, temp=1.0, seed=1)

    print("KERNEL_OK")
</pallas_src>

<mosaic_0001>
module attributes {stable_mosaic.version = 11 : i64} {
  func.func @_urt_score_kernel(%arg0: i32, %arg1: memref<4x256xf32, #tpu.memory_space<vmem>>, %arg2: memref<256x32xf32, #tpu.memory_space<vmem>>, %arg3: memref<1x32xf32, #tpu.memory_space<vmem>>, %arg4: memref<256x256xf32, #tpu.memory_space<vmem>>, %arg5: memref<1x256xf32, #tpu.memory_space<vmem>>, %arg6: memref<32x256xf32, #tpu.memory_space<vmem>>, %arg7: memref<256x8xf32, #tpu.memory_space<vmem>>, %arg8: memref<4x8xf32, #tpu.memory_space<vmem>>) attributes {dimension_semantics = [#tpu.dimension_semantics<parallel>], iteration_bounds = array<i64: 1>, scalar_prefetch = 0 : i64, scratch_operands = 0 : i64, tpu.core_type = #tpu.core_type<tc>, window_params = [{transform_indices = @transform_0, window_bounds = array<i64: 4, 256>}, {pipeline_mode = #tpu.pipeline_mode<synchronous>, transform_indices = @transform_1, window_bounds = array<i64: 256, 32>}, {pipeline_mode = #tpu.pipeline_mode<synchronous>, transform_indices = @transform_2, window_bounds = array<i64: 1, 32>}, {pipeline_mode = #tpu.pipeline_mode<synchronous>, transform_indices = @transform_3, window_bounds = array<i64: 256, 256>}, {pipeline_mode = #tpu.pipeline_mode<synchronous>, transform_indices = @transform_4, window_bounds = array<i64: 1, 256>}, {pipeline_mode = #tpu.pipeline_mode<synchronous>, transform_indices = @transform_5, window_bounds = array<i64: 32, 256>}, {pipeline_mode = #tpu.pipeline_mode<synchronous>, transform_indices = @transform_6, window_bounds = array<i64: 256, 8>}, {transform_indices = @transform_7, window_bounds = array<i64: 4, 8>}]} {
    %c0 = arith.constant 0 : index
    %c0_0 = arith.constant 0 : index
    %0 = vector.load %arg1[%c0, %c0_0] : memref<4x256xf32, #tpu.memory_space<vmem>>, vector<4x256xf32>
    %c0_1 = arith.constant 0 : index
    %c0_2 = arith.constant 0 : index
    %1 = vector.load %arg2[%c0_1, %c0_2] : memref<256x32xf32, #tpu.memory_space<vmem>>, vector<256x32xf32>
    %c0_3 = arith.constant 0 : index
    %c0_4 = arith.constant 0 : index
    %2 = vector.load %arg3[%c0_3, %c0_4] : memref<1x32xf32, #tpu.memory_space<vmem>>, vector<1x32xf32>
    %c0_5 = arith.constant 0 : index
    %c0_6 = arith.constant 0 : index
    %3 = vector.load %arg4[%c0_5, %c0_6] : memref<256x256xf32, #tpu.memory_space<vmem>>, vector<256x256xf32>
    %c0_7 = arith.constant 0 : index
    %c0_8 = arith.constant 0 : index
    %4 = vector.load %arg5[%c0_7, %c0_8] : memref<1x256xf32, #tpu.memory_space<vmem>>, vector<1x256xf32>
    %c0_9 = arith.constant 0 : index
    %c0_10 = arith.constant 0 : index
    %5 = vector.load %arg6[%c0_9, %c0_10] : memref<32x256xf32, #tpu.memory_space<vmem>>, vector<32x256xf32>
    %c0_11 = arith.constant 0 : index
    %c0_12 = arith.constant 0 : index
    %6 = vector.load %arg7[%c0_11, %c0_12] : memref<256x8xf32, #tpu.memory_space<vmem>>, vector<256x8xf32>
    %cst = arith.constant dense<0.000000e+00> : vector<4x32xf32>
    %7 = tpu.matmul %0, %1, %cst {dimension_numbers = #tpu.dot_dimension_numbers<[1], [0], [0], [1], [0, 0, 1, 1], [], []>} : vector<4x256xf32>, vector<256x32xf32>, vector<4x32xf32> -> vector<4x32xf32>
    %8 = vector.broadcast %2 : vector<1x32xf32> to vector<4x32xf32>
    %9 = arith.addf %7, %8 : vector<4x32xf32>
    %cst_13 = arith.constant dense<0.000000e+00> : vector<4x256xf32>
    %10 = tpu.matmul %0, %3, %cst_13 {dimension_numbers = #tpu.dot_dimension_numbers<[1], [0], [0], [1], [0, 0, 1, 1], [], []>} : vector<4x256xf32>, vector<256x256xf32>, vector<4x256xf32> -> vector<4x256xf32>
    %11 = vector.broadcast %4 : vector<1x256xf32> to vector<4x256xf32>
    %12 = arith.addf %10, %11 : vector<4x256xf32>
    %cst_14 = arith.constant dense<0.000000e+00> : vector<4x256xf32>
    %13 = tpu.matmul %9, %5, %cst_14 {dimension_numbers = #tpu.dot_dimension_numbers<[1], [0], [0], [1], [0, 0, 1, 1], [], []>} : vector<4x32xf32>, vector<32x256xf32>, vector<4x256xf32> -> vector<4x256xf32>
    %14 = arith.mulf %13, %12 : vector<4x256xf32>
    %cst_15 = arith.constant dense<0.000000e+00> : vector<4x8xf32>
    %15 = tpu.matmul %14, %6, %cst_15 {dimension_numbers = #tpu.dot_dimension_numbers<[1], [0], [0], [1], [0, 0, 1, 1], [], []>} : vector<4x256xf32>, vector<256x8xf32>, vector<4x8xf32> -> vector<4x8xf32>
    %16 = arith.mulf %12, %12 : vector<4x256xf32>
    %cst_16 = arith.constant dense<0.000000e+00> : vector<4x8xf32>
    %17 = tpu.matmul %16, %6, %cst_16 {dimension_numbers = #tpu.dot_dimension_numbers<[1], [0], [0], [1], [0, 0, 1, 1], [], []>} : vector<4x256xf32>, vector<256x8xf32>, vector<4x8xf32> -> vector<4x8xf32>
    %18 = arith.mulf %9, %9 : vector<4x32xf32>
    %cst_17 = arith.constant dense<0.000000e+00> : vector<4xf32>
    %19 = vector.multi_reduction <add>, %18, %cst_17 [1] : vector<4x32xf32> to vector<4xf32>
    %20 = vector.shape_cast %19 : vector<4xf32> to vector<4x1xf32>
    %cst_18 = arith.constant 9.99999993E-9 : f32
    %cst_19 = arith.constant 9.99999993E-9 : f32
    %21 = arith.mulf %cst_18, %cst_19 : f32
    %22 = vector.broadcast %20 : vector<4x1xf32> to vector<4x8xf32>
    %23 = arith.mulf %22, %17 : vector<4x8xf32>
    %24 = vector.broadcast %21 : f32 to vector<4x8xf32>
    %25 = arith.maximumf %23, %24 : vector<4x8xf32>
    %26 = math.rsqrt %25 : vector<4x8xf32>
    %cst_20 = arith.constant 1.000000e+00 : f32
    %27 = vector.broadcast %cst_20 : f32 to vector<4x8xf32>
    %28 = arith.mulf %26, %27 : vector<4x8xf32>
    %29 = arith.mulf %15, %28 : vector<4x8xf32>
    %cst_21 = arith.constant dense<0xFF800000> : vector<4xf32>
    %30 = vector.multi_reduction <maximumf>, %29, %cst_21 [1] : vector<4x8xf32> to vector<4xf32>
    %31 = vector.shape_cast %30 : vector<4xf32> to vector<4x1xf32>
    %32 = vector.broadcast %31 : vector<4x1xf32> to vector<4x8xf32>
    %33 = arith.subf %29, %32 : vector<4x8xf32>
    %34 = math.exp %33 : vector<4x8xf32>
    %cst_22 = arith.constant dense<0.000000e+00> : vector<4xf32>
    %35 = vector.multi_reduction <add>, %34, %cst_22 [1] : vector<4x8xf32> to vector<4xf32>
    %36 = vector.shape_cast %35 : vector<4xf32> to vector<4x1xf32>
    %37 = vector.broadcast %36 : vector<4x1xf32> to vector<4x8xf32>
    %38 = arith.divf %34, %37 : vector<4x8xf32>
    %c0_23 = arith.constant 0 : index
    %c0_24 = arith.constant 0 : index
    %39 = vector.load %arg8[%c0_23, %c0_24] : memref<4x8xf32, #tpu.memory_space<vmem>>, vector<4x8xf32>
    tpu.vector_store %arg8[%c0_23, %c0_24], %38 {strides = array<i32>} : memref<4x8xf32, #tpu.memory_space<vmem>>, vector<4x8xf32>,
    return
  }
  func.func @transform_0(%arg0: i32) -> (i32, i32) {
    %c0_i32 = arith.constant 0 : i32
    %c0_i32_0 = arith.constant 0 : i32
    return %arg0, %c0_i32 : i32, i32
  }
  func.func @transform_1(%arg0: i32) -> (i32, i32) {
    %c0_i32 = arith.constant 0 : i32
    %c0_i32_0 = arith.constant 0 : i32
    %c0_i32_1 = arith.constant 0 : i32
    return %c0_i32, %c0_i32_0 : i32, i32
  }
  func.func @transform_2(%arg0: i32) -> (i32, i32) {
    %c0_i32 = arith.constant 0 : i32
    %c0_i32_0 = arith.constant 0 : i32
    %c0_i32_1 = arith.constant 0 : i32
    return %c0_i32, %c0_i32_0 : i32, i32
  }
  func.func @transform_3(%arg0: i32) -> (i32, i32) {
    %c0_i32 = arith.constant 0 : i32
    %c0_i32_0 = arith.constant 0 : i32
    %c0_i32_1 = arith.constant 0 : i32
    return %c0_i32, %c0_i32_0 : i32, i32
  }
  func.func @transform_4(%arg0: i32) -> (i32, i32) {
    %c0_i32 = arith.constant 0 : i32
    %c0_i32_0 = arith.constant 0 : i32
    %c0_i32_1 = arith.constant 0 : i32
    return %c0_i32, %c0_i32_0 : i32, i32
  }
  func.func @transform_5(%arg0: i32) -> (i32, i32) {
    %c0_i32 = arith.constant 0 : i32
    %c0_i32_0 = arith.constant 0 : i32
    %c0_i32_1 = arith.constant 0 : i32
    return %c0_i32, %c0_i32_0 : i32, i32
  }
  func.func @transform_6(%arg0: i32) -> (i32, i32) {
    %c0_i32 = arith.constant 0 : i32
    %c0_i32_0 = arith.constant 0 : i32
    %c0_i32_1 = arith.constant 0 : i32
    return %c0_i32, %c0_i32_0 : i32, i32
  }
  func.func @transform_7(%arg0: i32) -> (i32, i32) {
    %c0_i32 = arith.constant 0 : i32
    %c0_i32_0 = arith.constant 0 : i32
    return %arg0, %c0_i32 : i32, i32
  }
}

</mosaic_0001>

<bundles_post_ra>
// kernel: tpu_custom_call.1
= control target key start
LH: loop header
LB: loop body
LE: loop exit
PB: predicated region body
PF: predicated region fallthrough
CT: control target
= control target key end

     0   :  { %s1378_s0 = inlined_call_operand.vmem [shape: f32[4,256], index: 0, kind: input, shape index: {}]   ;;  %s1379_s1 = inlined_call_operand.vmem [shape: f32[256,32], index: 1, kind: input, shape index: {}]   ;;  %s1380_s2 = inlined_call_operand.vmem [shape: f32[1,32], index: 2, kind: input, shape index: {}]   ;;  %s1381_s3 = inlined_call_operand.vmem [shape: f32[256,256], index: 3, kind: input, shape index: {}]   ;;  %s1382_s4 = inlined_call_operand.vmem [shape: f32[1,256], index: 4, kind: input, shape index: {}]   ;;  %s1383_s5 = inlined_call_operand.vmem [shape: f32[32,256], index: 5, kind: input, shape index: {}]   ;;  %s1384_s6 = inlined_call_operand.vmem [shape: f32[256,8], index: 6, kind: input, shape index: {}]   ;;  %s1385_s7 = inlined_call_operand.hbm [shape: f32[4,8], index: 7, kind: output, shape index: {}]  }
   0x1   :  { %v44_v0 = vld [vmem:[%s1379_s1 + $0x80] sm:$0xff]  ;;  %v45_v1 = vld [vmem:[%s1379_s1 + $0x88] sm:$0xff]  ;;  %v64_v4 = vld [vmem:[%s1381_s3 + $0x18] sm:$0xff] }
   0x2   :  { %v62_v2 = vld [vmem:[%s1381_s3 + $0x8] sm:$0xff]  ;;  %v689_v3 = vpack.c.bf16 %v45_v1, %v44_v0  ;;  %v28_v5 = vld [vmem:[%s1379_s1] sm:$0xff]  ;;  %v63_v10 = vld [vmem:[%s1381_s3 + $0x10] sm:$0xff] }
   0x3   :  { %v29_v6 = vld [vmem:[%s1379_s1 + $0x8] sm:$0xff]  ;;  %v721_v7 = vpack.c.bf16 %v64_v4, %v62_v2  ;;  %v61_v9 = vld [vmem:[%s1381_s3] sm:$0xff]  ;;  %v46_v11 = vld [vmem:[%s1379_s1 + $0x90] sm:$0xff] }
   0x4   :  { %v691_v8 = vpack.c.bf16 %v29_v6, %v28_v5  ;;  %690 = vmatprep.subr.bf16.mxu0 %v689_v3  ;;  %v723_v12 = vpack.c.bf16 %v63_v10, %v61_v9  ;;  %v47_v13 = vld [vmem:[%s1379_s1 + $0x98] sm:$0xff]  ;;  %v66_v14 = vld [vmem:[%s1381_s3 + $0x28] sm:$0xff]  ;;  %v30_v18 = vld [vmem:[%s1379_s1 + $0x10] sm:$0xff] }
   0x5   :  { %v68_v15 = vld [vmem:[%s1381_s3 + $0x38] sm:$0xff]  ;;  %722 = vmatprep.subr.bf16.mxu1 %v721_v7  ;;  %v693_v16 = vpack.c.bf16 %v47_v13, %v46_v11  ;;  %v65_v20 = vld [vmem:[%s1381_s3 + $0x20] sm:$0xff]  ;;  %v67_v22 = vld [vmem:[%s1381_s3 + $0x30] sm:$0xff] }
   0x6   :  { %692 = vmatpush3.bf16.msra.mxu0 %v691_v8  ;;  %v725_v17 = vpack.c.bf16 %v68_v15, %v66_v14  ;;  %v31_v19 = vld [vmem:[%s1379_s1 + $0x18] sm:$0xff]  ;;  %724 = vmatpush1.bf16.msra.mxu1 %v723_v12  ;;  %v48_v23 = vld [vmem:[%s1379_s1 + $0xa0] sm:$0xff]  ;;  %v49_v24 = vld [vmem:[%s1379_s1 + $0xa8] sm:$0xff]  ;;  %v727_v25 = vpack.c.bf16 %v67_v22, %v65_v20 }
   0x7   :  { %v695_v21 = vpack.c.bf16 %v31_v19, %v30_v18  ;;  %694 = vmatprep.subr.bf16.mxu0 %v693_v16  ;;  %v697_v26 = vpack.c.bf16 %v49_v24, %v48_v23  ;;  %v70_v27 = vld [vmem:[%s1381_s3 + $0x48] sm:$0xff]  ;;  %v72_v28 = vld [vmem:[%s1381_s3 + $0x58] sm:$0xff]  ;;  %v32_v29 = vld [vmem:[%s1379_s1 + $0x20] sm:$0xff] }
   0x8   :  { %726 = vmatprep.subr.bf16.mxu1 %v725_v17  ;;  %v729_v30 = vpack.c.bf16 %v72_v28, %v70_v27  ;;  %v33_v31 = vld [vmem:[%s1379_s1 + $0x28] sm:$0xff]  ;;  %v69_v32 = vld [vmem:[%s1381_s3 + $0x40] sm:$0xff]  ;;  %v71_v33 = vld [vmem:[%s1381_s3 + $0x50] sm:$0xff] }
   0x9   :  { %v699_v34 = vpack.c.bf16 %v33_v31, %v32_v29  ;;  %v50_v35 = vld [vmem:[%s1379_s1 + $0xb0] sm:$0xff]  ;;  %v51_v36 = vld [vmem:[%s1379_s1 + $0xb8] sm:$0xff]  ;;  %v74_v37 = vld [vmem:[%s1381_s3 + $0x68] sm:$0xff]  ;;  %v731_v38 = vpack.c.bf16 %v71_v33, %v69_v32 }
   0xa   :  { %696 = vmatpush3.bf16.msra.mxu0 %v695_v21  ;;  %728 = vmatpush1.bf16.msra.mxu1 %v727_v25  ;;  %v701_v39 = vpack.c.bf16 %v51_v36, %v50_v35  ;;  %v76_v40 = vld [vmem:[%s1381_s3 + $0x78] sm:$0xff]  ;;  %v34_v41 = vld [vmem:[%s1379_s1 + $0x30] sm:$0xff]  ;;  %v73_v44 = vld [vmem:[%s1381_s3 + $0x60] sm:$0xff] }
   0xb   :  { %698 = vmatprep.subr.bf16.mxu0 %v697_v26  ;;  %v35_v42 = vld [vmem:[%s1379_s1 + $0x38] sm:$0xff]  ;;  %730 = vmatprep.subr.bf16.mxu1 %v729_v30  ;;  %v733_v43 = vpack.c.bf16 %v76_v40, %v74_v37  ;;  %v75_v45 = vld [vmem:[%s1381_s3 + $0x70] sm:$0xff]  ;;  %v52_v46 = vld [vmem:[%s1379_s1 + $0xc0] sm:$0xff] }
   0xc   :  { %v53_v47 = vld [vmem:[%s1379_s1 + $0xc8] sm:$0xff]  ;;  %v80_v49 = vld [vmem:[%s1381_s3 + $0x98] sm:$0xff]  ;;  %v703_v50 = vpack.c.bf16 %v35_v42, %v34_v41  ;;  %v735_v51 = vpack.c.bf16 %v75_v45, %v73_v44  ;;  %v36_v53 = vld [vmem:[%s1379_s1 + $0x40] sm:$0xff] }
   0xd   :  { %v78_v48 = vld [vmem:[%s1381_s3 + $0x88] sm:$0xff]  ;;  %v705_v52 = vpack.c.bf16 %v53_v47, %v52_v46  ;;  %v77_v55 = vld [vmem:[%s1381_s3 + $0x80] sm:$0xff]  ;;  %v79_v57 = vld [vmem:[%s1381_s3 + $0x90] sm:$0xff] }
   0xe   :  { %700 = vmatpush3.bf16.msra.mxu0 %v699_v34  ;;  %732 = vmatpush1.bf16.msra.mxu1 %v731_v38  ;;  %v37_v54 = vld [vmem:[%s1379_s1 + $0x48] sm:$0xff]  ;;  %v737_v56 = vpack.c.bf16 %v80_v49, %v78_v48  ;;  %v54_v58 = vld [vmem:[%s1379_s1 + $0xd0] sm:$0xff]  ;;  %v55_v59 = vld [vmem:[%s1379_s1 + $0xd8] sm:$0xff]  ;;  %v739_v63 = vpack.c.bf16 %v79_v57, %v77_v55 }
   0xf   :  { %702 = vmatprep.subr.bf16.mxu0 %v701_v39  ;;  %734 = vmatprep.subr.bf16.mxu1 %v733_v43  ;;  %v82_v60 = vld [vmem:[%s1381_s3 + $0xa8] sm:$0xff]  ;;  %v84_v61 = vld [vmem:[%s1381_s3 + $0xb8] sm:$0xff]  ;;  %v707_v62 = vpack.c.bf16 %v37_v54, %v36_v53  ;;  %v709_v0 = vpack.c.bf16 %v55_v59, %v54_v58  ;;  %v38_v1 = vld [vmem:[%s1379_s1 + $0x50] sm:$0xff] }
  0x10   :  { %v39_v2 = vld [vmem:[%s1379_s1 + $0x58] sm:$0xff]  ;;  %v81_v3 = vld [vmem:[%s1381_s3 + $0xa0] sm:$0xff]  ;;  %v741_v4 = vpack.c.bf16 %v84_v61, %v82_v60  ;;  %v83_v5 = vld [vmem:[%s1381_s3 + $0xb0] sm:$0xff] }
  0x11   :  { %v56_v6 = vld [vmem:[%s1379_s1 + $0xe0] sm:$0xff]  ;;  %v57_v7 = vld [vmem:[%s1379_s1 + $0xe8] sm:$0xff]  ;;  %v88_v9 = vld [vmem:[%s1381_s3 + $0xd8] sm:$0xff]  ;;  %v711_v10 = vpack.c.bf16 %v39_v2, %v38_v1  ;;  %v743_v12 = vpack.c.bf16 %v83_v5, %v81_v3 }
  0x12   :  { %704 = vmatpush3.bf16.msra.mxu0 %v703_v50  ;;  %736 = vmatpush1.bf16.msra.mxu1 %v735_v51  ;;  %v86_v8 = vld [vmem:[%s1381_s3 + $0xc8] sm:$0xff]  ;;  %v40_v11 = vld [vmem:[%s1379_s1 + $0x60] sm:$0xff]  ;;  %v713_v13 = vpack.c.bf16 %v57_v7, %v56_v6  ;;  %v87_v18 = vld [vmem:[%s1381_s3 + $0xd0] sm:$0xff] }
  0x13   :  { %706 = vmatprep.subr.bf16.mxu0 %v705_v52  ;;  %738 = vmatprep.subr.bf16.mxu1 %v737_v56  ;;  %v41_v14 = vld [vmem:[%s1379_s1 + $0x68] sm:$0xff]  ;;  %v85_v15 = vld [vmem:[%s1381_s3 + $0xc0] sm:$0xff]  ;;  %v745_v17 = vpack.c.bf16 %v88_v9, %v86_v8  ;;  %v58_v19 = vld [vmem:[%s1379_s1 + $0xf0] sm:$0xff] }
  0x14   :  { %v1100_v16 = vld [vmem:[%s1378_s0] sm:$0xff]  ;;  %v59_v20 = vld [vmem:[%s1379_s1 + $0xf8] sm:$0xff]  ;;  %v90_v22 = vld [vmem:[%s1381_s3 + $0xe8] sm:$0xff]  ;;  %v715_v24 = vpack.c.bf16 %v41_v14, %v40_v11  ;;  %v747_v25 = vpack.c.bf16 %v87_v18, %v85_v15 }
  0x15   :  { %v173_v21 = vcombine.high %v1100_v16, %v1100_v16  ;;  %v92_v23 = vld [vmem:[%s1381_s3 + $0xf8] sm:$0xff]  ;;  %v717_v26 = vpack.c.bf16 %v59_v20, %v58_v19  ;;  %v42_v27 = vld [vmem:[%s1379_s1 + $0x70] sm:$0xff]  ;;  %v89_v30 = vld [vmem:[%s1381_s3 + $0xe0] sm:$0xff] }
  0x16   :  { %708 = vmatpush3.bf16.msra.mxu0 %v707_v62  ;;  %740 = vmatpush1.bf16.msra.mxu1 %v739_v63  ;;  %v43_v28 = vld [vmem:[%s1379_s1 + $0x78] sm:$0xff]  ;;  %v749_v29 = vpack.c.bf16 %v92_v23, %v90_v22  ;;  %v91_v31 = vld [vmem:[%s1381_s3 + $0xf0] sm:$0xff]  ;;  %v94_v32 = vld [vmem:[%s1381_s3 + $0x108] sm:$0xff] }
  0x17   :  { %710 = vmatprep.subr.bf16.mxu0 %v709_v0  ;;  %742 = vmatprep.subr.bf16.mxu1 %v741_v4  ;;  %v96_v33 = vld [vmem:[%s1381_s3 + $0x118] sm:$0xff]  ;;  %v719_v34 = vpack.c.bf16 %v43_v28, %v42_v27  ;;  %v751_v35 = vpack.c.bf16 %v91_v31, %v89_v30  ;;  %v93_v37 = vld [vmem:[%s1381_s3 + $0x100] sm:$0xff]  ;;  %v95_v38 = vld [vmem:[%s1381_s3 + $0x110] sm:$0xff] }
  0x18   :  { %239 = vmatprep.mubr.f32.mxu0 %v173_v21  ;;  %320 = vmatprep.mubr.f32.mxu1 %v173_v21  ;;  %v753_v36 = vpack.c.bf16 %v96_v33, %v94_v32  ;;  %v98_v39 = vld [vmem:[%s1381_s3 + $0x128] sm:$0xff]  ;;  %v100_v40 = vld [vmem:[%s1381_s3 + $0x138] sm:$0xff]  ;;  %v755_v43 = vpack.c.bf16 %v95_v38, %v93_v37  ;;  %v126_v45 = vld [vmem:[%s1383_s5] sm:$0xff] }
  0x19   :  { %v127_v41 = vld [vmem:[%s1383_s5 + $0x8] sm:$0xff]  ;;  %v129_v42 = vld [vmem:[%s1383_s5 + $0x18] sm:$0xff]  ;;  %v128_v46 = vld [vmem:[%s1383_s5 + $0x10] sm:$0xff] }
  0x1a   :  { %712 = vmatpush3.bf16.msra.mxu0 %v711_v10  ;;  %744 = vmatpush1.bf16.msra.mxu1 %v743_v12  ;;  %v785_v44 = vpack.c.bf16 %v129_v42, %v127_v41 }
  0x1b   :  { %714 = vmatprep.subr.bf16.mxu0 %v713_v13  ;;  %746 = vmatprep.subr.bf16.mxu1 %v745_v17 }
  0x1e   :  { %716 = vmatpush3.bf16.msra.mxu0 %v715_v24  ;;  %748 = vmatpush1.bf16.msra.mxu1 %v747_v25 }
  0x1f   :  { %718 = vmatprep.subr.bf16.mxu0 %v717_v26  ;;  %750 = vmatprep.subr.bf16.mxu1 %v749_v29 }
  0x22   :  { %720 = vmatpush3.bf16.msra.mxu0 %v719_v34  ;;  %752 = vmatpush1.bf16.msra.mxu1 %v751_v35 }
  0x23   :  { %12 = vsyncpa [#allocation3], 0  ;;  %754 = vmatprep.subr.bf16.mxu1 %v753_v36  ;;  %v757_v47 = vpack.c.bf16 %v100_v40, %v98_v39  ;;  %v97_v48 = vld [vmem:[%s1381_s3 + $0x120] sm:$0xff]  ;;  %v99_v49 = vld [vmem:[%s1381_s3 + $0x130] sm:$0xff]  ;;  %v787_v50 = vpack.c.bf16 %v128_v46, %v126_v45  ;;  %786 = vmatprep.subr.bf16.mxu0 %v785_v44  ;;  %vm327_vm0 = vcmask 261120   ;;  %vm547_vm1 = vcmask 257024  }
  0x24   :  { %v102_v51 = vld [vmem:[%s1381_s3 + $0x148] sm:$0xff]  ;;  %v104_v52 = vld [vmem:[%s1381_s3 + $0x158] sm:$0xff]  ;;  %v759_v53 = vpack.c.bf16 %v99_v49, %v97_v48  ;;  %v101_v55 = vld [vmem:[%s1381_s3 + $0x140] sm:$0xff]  ;;  %vm555_vm2 = vcmask 60416  }
  0x25   :  { %240 = vmatmul.mubr.f32.vlgmr.msra.gmra.mrb[0].mxu0 %v1100_v16  ;;  %v761_v54 = vpack.c.bf16 %v104_v52, %v102_v51  ;;  %v103_v56 = vld [vmem:[%s1381_s3 + $0x150] sm:$0xff]  ;;  %v106_v57 = vld [vmem:[%s1381_s3 + $0x168] sm:$0xff]  ;;  %v108_v58 = vld [vmem:[%s1381_s3 + $0x178] sm:$0xff] }
  0x26   :  { %788 = vmatpush1.bf16.msra.mxu0 %v787_v50  ;;  %756 = vmatpush1.bf16.msra.mxu1 %v755_v43  ;;  %v763_v59 = vpack.c.bf16 %v103_v56, %v101_v55  ;;  %v765_v60 = vpack.c.bf16 %v108_v58, %v106_v57  ;;  %v105_v61 = vld [vmem:[%s1381_s3 + $0x160] sm:$0xff]  ;;  %v107_v62 = vld [vmem:[%s1381_s3 + $0x170] sm:$0xff]  ;;  %v110_v63 = vld [vmem:[%s1381_s3 + $0x188] sm:$0xff] }
  0x27   :  { %758 = vmatprep.subr.bf16.mxu1 %v757_v47  ;;  %v112_v0 = vld [vmem:[%s1381_s3 + $0x198] sm:$0xff]  ;;  %v767_v1 = vpack.c.bf16 %v107_v62, %v105_v61  ;;  %v109_v3 = vld [vmem:[%s1381_s3 + $0x180] sm:$0xff]  ;;  %v111_v4 = vld [vmem:[%s1381_s3 + $0x190] sm:$0xff] }
  0x28   :  { %v769_v2 = vpack.c.bf16 %v112_v0, %v110_v63  ;;  %v114_v5 = vld [vmem:[%s1381_s3 + $0x1a8] sm:$0xff]  ;;  %v116_v6 = vld [vmem:[%s1381_s3 + $0x1b8] sm:$0xff]  ;;  %v771_v7 = vpack.c.bf16 %v111_v4, %v109_v3  ;;  %v113_v9 = vld [vmem:[%s1381_s3 + $0x1a0] sm:$0xff] }
  0x29   :  { %v773_v8 = vpack.c.bf16 %v116_v6, %v114_v5  ;;  %v115_v10 = vld [vmem:[%s1381_s3 + $0x1b0] sm:$0xff]  ;;  %v118_v11 = vld [vmem:[%s1381_s3 + $0x1c8] sm:$0xff]  ;;  %v120_v12 = vld [vmem:[%s1381_s3 + $0x1d8] sm:$0xff] }
  0x2a   :  { %760 = vmatpush1.bf16.msra.mxu1 %v759_v53  ;;  %v775_v13 = vpack.c.bf16 %v115_v10, %v113_v9  ;;  %v777_v14 = vpack.c.bf16 %v120_v12, %v118_v11  ;;  %v117_v15 = vld [vmem:[%s1381_s3 + $0x1c0] sm:$0xff]  ;;  %v119_v17 = vld [vmem:[%s1381_s3 + $0x1d0] sm:$0xff]  ;;  %v122_v18 = vld [vmem:[%s1381_s3 + $0x1e8] sm:$0xff] }
  0x2b   :  { %762 = vmatprep.subr.bf16.mxu1 %v761_v54  ;;  %v124_v19 = vld [vmem:[%s1381_s3 + $0x1f8] sm:$0xff]  ;;  %v779_v20 = vpack.c.bf16 %v119_v17, %v117_v15  ;;  %v121_v22 = vld [vmem:[%s1381_s3 + $0x1e0] sm:$0xff]  ;;  %v123_v23 = vld [vmem:[%s1381_s3 + $0x1f0] sm:$0xff] }
  0x2c   :  { %v781_v21 = vpack.c.bf16 %v124_v19, %v122_v18  ;;  %v783_v24 = vpack.c.bf16 %v123_v23, %v121_v22  ;;  %v131_v25 = vld [vmem:[%s1383_s5 + $0x28] sm:$0xff]  ;;  %v133_v26 = vld [vmem:[%s1383_s5 + $0x38] sm:$0xff]  ;;  %v130_v28 = vld [vmem:[%s1383_s5 + $0x20] sm:$0xff]  ;;  %v246_v23 = vlaneseq }
  0x2d   :  { %v789_v27 = vpack.c.bf16 %v133_v26, %v131_v25  ;;  %v132_v29 = vld [vmem:[%s1383_s5 + $0x30] sm:$0xff]  ;;  %v150_v31 = vld [vmem:[%s1384_s6 + $0x80] sm:$0xff]  ;;  %v151_v32 = vld [vmem:[%s1384_s6 + $0x88] sm:$0xff] }
  0x2e   :  { %764 = vmatpush1.bf16.msra.mxu1 %v763_v59  ;;  %v791_v30 = vpack.c.bf16 %v132_v29, %v130_v28  ;;  %v793_v33 = vpack.c.bf16 %v151_v32, %v150_v31  ;;  %v134_v34 = vld [vmem:[%s1384_s6] sm:$0xff]  ;;  %v135_v35 = vld [vmem:[%s1384_s6 + $0x8] sm:$0xff]  ;;  %v152_v37 = vld [vmem:[%s1384_s6 + $0x90] sm:$0xff] }
  0x2f   :  { %766 = vmatprep.subr.bf16.mxu1 %v765_v60  ;;  %790 = vmatprep.subr.bf16.mxu0 %v789_v27  ;;  %v1265_v36 = vpack.c.bf16 %v135_v35, %v134_v34  ;;  %v153_v38 = vld [vmem:[%s1384_s6 + $0x98] sm:$0xff]  ;;  %v136_v39 = vld [vmem:[%s1384_s6 + $0x10] sm:$0xff]  ;;  %v154_v42 = vld [vmem:[%s1384_s6 + $0xa0] sm:$0xff] }
  0x30   :  { %792 = vmatpush1.bf16.msra.mxu0 %v791_v30  ;;  %v1277_v40 = vpack.c.bf16 %v153_v38, %v152_v37  ;;  %v137_v41 = vld [vmem:[%s1384_s6 + $0x18] sm:$0xff]  ;;  %v155_v43 = vld [vmem:[%s1384_s6 + $0xa8] sm:$0xff]  ;;  %v138_v46 = vld [vmem:[%s1384_s6 + $0x20] sm:$0xff] }
  0x31   :  { %794 = vmatprep.subr.bf16.mxu0 %v793_v33  ;;  %v799_v44 = vpack.c.bf16 %v137_v41, %v136_v39  ;;  %v801_v45 = vpack.c.bf16 %v155_v43, %v154_v42  ;;  %v139_v47 = vld [vmem:[%s1384_s6 + $0x28] sm:$0xff]  ;;  %v156_v48 = vld [vmem:[%s1384_s6 + $0xb0] sm:$0xff]  ;;  %v157_v49 = vld [vmem:[%s1384_s6 + $0xb8] sm:$0xff] }
  0x32   :  { %768 = vmatpush1.bf16.msra.mxu1 %v767_v1  ;;  %v803_v50 = vpack.c.bf16 %v139_v47, %v138_v46  ;;  %v805_v51 = vpack.c.bf16 %v157_v49, %v156_v48  ;;  %v140_v52 = vld [vmem:[%s1384_s6 + $0x30] sm:$0xff]  ;;  %v141_v53 = vld [vmem:[%s1384_s6 + $0x38] sm:$0xff]  ;;  %v158_v54 = vld [vmem:[%s1384_s6 + $0xc0] sm:$0xff] }
  0x33   :  { %770 = vmatprep.subr.bf16.mxu1 %v769_v2  ;;  %v159_v55 = vld [vmem:[%s1384_s6 + $0xc8] sm:$0xff]  ;;  %v807_v56 = vpack.c.bf16 %v141_v53, %v140_v52  ;;  %v142_v58 = vld [vmem:[%s1384_s6 + $0x40] sm:$0xff]  ;;  %v160_v60 = vld [vmem:[%s1384_s6 + $0xd0] sm:$0xff] }
  0x34   :  { %v809_v57 = vpack.c.bf16 %v159_v55, %v158_v54  ;;  %v143_v59 = vld [vmem:[%s1384_s6 + $0x48] sm:$0xff]  ;;  %v161_v61 = vld [vmem:[%s1384_s6 + $0xd8] sm:$0xff]  ;;  %v144_v0 = vld [vmem:[%s1384_s6 + $0x50] sm:$0xff] }
  0x35   :  { %v811_v62 = vpack.c.bf16 %v143_v59, %v142_v58  ;;  %v813_v63 = vpack.c.bf16 %v161_v61, %v160_v60  ;;  %v145_v1 = vld [vmem:[%s1384_s6 + $0x58] sm:$0xff]  ;;  %v162_v2 = vld [vmem:[%s1384_s6 + $0xe0] sm:$0xff]  ;;  %v163_v3 = vld [vmem:[%s1384_s6 + $0xe8] sm:$0xff] }
  0x36   :  { %772 = vmatpush1.bf16.msra.mxu1 %v771_v7  ;;  %v815_v4 = vpack.c.bf16 %v145_v1, %v144_v0  ;;  %v817_v5 = vpack.c.bf16 %v163_v3, %v162_v2  ;;  %v146_v6 = vld [vmem:[%s1384_s6 + $0x60] sm:$0xff]  ;;  %v147_v7 = vld [vmem:[%s1384_s6 + $0x68] sm:$0xff]  ;;  %v164_v9 = vld [vmem:[%s1384_s6 + $0xf0] sm:$0xff] }
  0x37   :  { %774 = vmatprep.subr.bf16.mxu1 %v773_v8  ;;  %v819_v8 = vpack.c.bf16 %v147_v7, %v146_v6  ;;  %v165_v10 = vld [vmem:[%s1384_s6 + $0xf8] sm:$0xff]  ;;  %v148_v12 = vld [vmem:[%s1384_s6 + $0x70] sm:$0xff]  ;;  %v582_v17 = vld [vmem:[%s1380_s2] ss:$0 sm:$0xff] }
  0x38   :  { %v821_v11 = vpack.c.bf16 %v165_v10, %v164_v9  ;;  %v125_v26 = vld [vmem:[%s1382_s4] sm:$0x3]  ;;  %s891_s4 = smov [#allocation2]  }
  0x39   :  { %s574_s28 = sshll.u32 %s891_s4, 4  ;;  %s575_s28 = int_to_ptr.vmem [resolvable:$true] %s574_s28 }
  0x3a   :  { %776 = vmatpush1.bf16.msra.mxu1 %v775_v13  ;;  %v149_v13 = vld [vmem:[%s1384_s6 + $0x78] sm:$0xff]  ;;  %s866_s29 = scalar_lea.vmem %s575_s28, 64  ;;  %p871_p1 = scmp.lt.s32.totalorder %s575_s28, %s575_s28 }
  0x3b   :  { %778 = vmatprep.subr.bf16.mxu1 %v777_v14  ;;  %v823_v14 = vpack.c.bf16 %v149_v13, %v148_v12  ;;  %p867_p0 = scmp.ne.s32.totalorder %s575_s28, %s866_s29  ;;  %p872_p2 = scmp.lt.s32.totalorder %s866_s29, %s866_s29 }
  0x3d   :  { %p873_p3 = por %p872_p2, %p871_p1 }
  0x3e   :  { %780 = vmatpush1.bf16.msra.mxu1 %v779_v20 }
  0x3f   :  { %782 = vmatprep.subr.bf16.mxu1 %v781_v21  ;;  %p874_p4 = pnand %p873_p3, %p867_p0 }
  0x42   :  { %784 = vmatpush1.bf16.msra.mxu1 %v783_v24  ;;  %v247_v24 = vshrl.u32 %v246_v23, 7 }
  0x43   :  { %826 = vmatprep.subr.bf16.mxu1 %v793_v33 }
  0x44   :  { %v248_v25 = vsub.s32 0, %v247_v24  ;;  %v252_v27 = vsub.s32 1, %v247_v24 }
  0x45   :  { %321 = vmatmul.mubr.f32.vlgmr.msra.gmra.mrb[0].mxu1 %v1100_v16  ;;  %v890_v16 = vmov 0.0  }
  0x46   :  { %395 = vmatprep.mubr.f32.mxu0 %v890_v16  ;;  %828 = vmatpush3.bf16.msra.mxu1 %v1265_v36  ;;  %v249_v28 = vrot.slane %v125_v26, %v248_v25  ;;  %v253_v29 = vrot.slane %v125_v26, %v252_v27 }
  0x47   :  { %830 = vmatprep.subr.bf16.mxu1 %v1277_v40 }
  0x4a   :  { %832 = vmatpush3.bf16.msra.mxu1 %v799_v44 }
  0x4b   :  { %834 = vmatprep.subr.bf16.mxu1 %v801_v45 }
  0x4e   :  { %836 = vmatpush3.bf16.msra.mxu1 %v803_v50 }
  0x4f   :  { %838 = vmatprep.subr.bf16.mxu1 %v805_v51 }
  0x52   :  { %840 = vmatpush3.bf16.msra.mxu1 %v807_v56 }
  0x53   :  { %842 = vmatprep.subr.bf16.mxu1 %v809_v57 }
  0x56   :  { %844 = vmatpush3.bf16.msra.mxu1 %v811_v62 }
  0x57   :  { %846 = vmatprep.subr.bf16.mxu1 %v813_v63 }
  0x5a   :  { %848 = vmatpush3.bf16.msra.mxu1 %v815_v4 }
  0x5b   :  { %850 = vmatprep.subr.bf16.mxu1 %v817_v5 }
  0x5e   :  { %852 = vmatpush3.bf16.msra.mxu1 %v819_v8 }
  0x5f   :  { %854 = vmatprep.subr.bf16.mxu1 %v821_v11 }
  0x62   :  { %856 = vmatpush3.bf16.msra.mxu1 %v823_v14 }
  0xf8   :  { %v616_v15 = vpop.f32.mrb[0].mxu0 }
  0xf9   :  { %v617_v18 = vpop.f32.mrb[1].mxu0 }
  0xfa   :  { %v618_v19 = vadd.f32 %v617_v18, %v616_v15 }
  0xfc   :  { %v242_v20 = vadd.f32 %v618_v19, %v582_v17 }
  0xfe   :  { %583 = vmatmul.mubr.msk.f32.vlgmr.msra.gmra.mrb[2].mxu0 %vm327_vm0, %v242_v20  ;;  %v546_v21 = vmul.f32 %v242_v20, %v242_v20 }
  0xff   :  { %796 = vmatpush3.bf16.msra.mxu0 %v1265_v36 }
 0x100   :  { %v548_v22 = vsel %vm547_vm1, %v546_v21, 0.0  ;;  %798 = vmatprep.subr.bf16.mxu0 %v1277_v40 }
 0x101   :  { %549 = vadd.xlane.f32.xlu0 %v548_v22 }
 0x103   :  { %800 = vmatpush3.bf16.msra.mxu0 %v799_v44 }
 0x104   :  { %802 = vmatprep.subr.bf16.mxu0 %v801_v45 }
 0x107   :  { %804 = vmatpush3.bf16.msra.mxu0 %v803_v50 }
 0x108   :  { %806 = vmatprep.subr.bf16.mxu0 %v805_v51 }
 0x10b   :  { %808 = vmatpush3.bf16.msra.mxu0 %v807_v56 }
 0x10c   :  { %810 = vmatprep.subr.bf16.mxu0 %v809_v57 }
 0x10f   :  { %812 = vmatpush3.bf16.msra.mxu0 %v811_v62 }
 0x110   :  { %814 = vmatprep.subr.bf16.mxu0 %v813_v63 }
 0x113   :  { %816 = vmatpush3.bf16.msra.mxu0 %v815_v4 }
 0x114   :  { %818 = vmatprep.subr.bf16.mxu0 %v817_v5 }
 0x117   :  { %820 = vmatpush3.bf16.msra.mxu0 %v819_v8 }
 0x118   :  { %822 = vmatprep.subr.bf16.mxu0 %v821_v11  ;;  %v322_v30 = vpop.f32.mrb[0].mxu1 }
 0x119   :  { %v323_v16 = vadd.f32 %v322_v30, %v249_v28  ;;  %v324_v31 = vpop.f32.mrb[1].mxu1 }
 0x11a   :  { %v325_v32 = vadd.f32 %v324_v31, %v253_v29 }
 0x11b   :  { %824 = vmatpush3.bf16.msra.mxu0 %v823_v14  ;;  %v474_v33 = vmul.f32 %v323_v16, %v323_v16 }
 0x11c   :  { %v475_v34 = vmul.f32 %v325_v32, %v325_v32 }
 0x11e   :  { %540 = vmatprep.mubr.f32.mxu1 %v475_v34 }
 0x11f   :  { %541 = vmatmul.mubr.f32.vlgmr.msra.gmra.mrb[2].mxu1 %v474_v33 }
 0x18e   :  { %v550_v42 = vpop.xlane.xlu0 %549 }
 0x1d1   :  { %v397_v35 = vpop.f32.mrb[2].mxu0 }
 0x1d2   :  { %v399_v36 = vpop.f32.mrb[3].mxu0  ;;  %v402_v38 = vmul.f32 %v397_v35, %v323_v16 }
 0x1d3   :  { %v403_v37 = vmul.f32 %v399_v36, %v325_v32 }
 0x1d5   :  { %468 = vmatprep.mubr.f32.mxu0 %v403_v37 }
 0x1d6   :  { %469 = vmatmul.mubr.f32.vlgmr.msra.gmra.mrb[4].mxu0 %v402_v38 }
 0x1f2   :  { %v686_v39 = vpop.f32.mrb[2].mxu1 }
 0x1f3   :  { %v687_v40 = vpop.f32.mrb[3].mxu1 }
 0x1f4   :  { %v688_v41 = vadd.f32 %v687_v40, %v686_v39 }
 0x1f6   :  { %v551_v43 = vmul.f32 %v688_v41, %v550_v42 }
 0x1f8   :  { %v552_v44 = vmax.f32 %v551_v43, 1e-16 }
 0x1fa   :  { %860 = vrsqrt.f32 %v552_v44 }
 0x204   :  { %v861_v48 = vpop.eup %860 }
 0x2a9   :  { %v651_v45 = vpop.f32.mrb[4].mxu0 }
 0x2aa   :  { %v652_v46 = vpop.f32.mrb[5].mxu0 }
 0x2ab   :  { %v653_v47 = vadd.f32 %v652_v46, %v651_v45 }
 0x2ad   :  { %v554_v49 = vmul.f32 %v861_v48, %v653_v47 }
 0x2af   :  { %v556_v50 = vsel %vm555_vm2, %v554_v49, -inf }
 0x2b0   :  { %557 = vmax.xlane.f32.xlu0 %v556_v50 }
 0x33d   :  { %v558_v51 = vpop.xlane.xlu0 %557 }
 0x33e   :  { %v559_v52 = vsub.f32 %v554_v49, %v558_v51 }
 0x340   :  { %v560_v53 = vmul.f32 1.442695, %v559_v52 }
 0x342   :  { %862 = vpow2.f32 %v560_v53 }
 0x34c   :  { %v863_v54 = vpop.eup %862 }
 0x34d   :  { %v562_v55 = vsel %vm555_vm2, %v863_v54, 0.0 }
 0x34e   :  { %563 = vadd.xlane.f32.xlu1 %v562_v55 }
 0x3db   :  { %v564_v56 = vpop.xlane.xlu1 %563 }
 0x3dc   :  { %864 = vrcp.f32 %v564_v56 }
 0x3e6   :  { %v865_v57 = vpop.eup %864 }
 0x3e7   :  { %v566_v58 = vmul.f32 %v865_v57, %v863_v54 }
 0x3e9   :  { %567 = vst.msk [vmem:[#allocation2] sm:$0xf] %vm555_vm2, %v566_v58 }
 0x3ea   :  { %877 = shalt.err (!%p874_p4)
}
 0x3eb   :  { %s878_s9 = scalar_lea.hbm %s1385_s7, 64 }
 0x3ec   :  { %p879_p5 = scmp.ne.s32.totalorder %s1385_s7, %s878_s9  ;;  %p882_p6 = scmp.lt.u32.totalorder %s878_s9, %s1385_s7 }
 0x3ee   :  { %p884_p7 = pnand %p882_p6, %p879_p5 }
 0x3f0   :  { %887 = shalt.err (!%p884_p7)
}
 0x3f1   :  { %577 = dma.vmem_to_hbm [thread:$0]  %s575_s28, 64, %s1385_s7, [#allocation3]  }
 0x3f2   :  { %888 = dma.done.wait [#allocation3], 64  }
 0x3f3   :  { %889 = vsyncadd [#allocation3], 4294967232 }
 0x3f4   :  { %581 = vsyncpa [#allocation3], 1 }

</bundles_post_ra>
